<compile_context>
chip_gen: v5e
topology: v5e:2x2
jax: 0.10.0
libtpu: 0.0.40
codegen_flags: <defaults>
</compile_context>

<pallas_src>
import functools

import jax
import jax.numpy as jnp
from jax.experimental import pallas as pl
from jax.experimental.pallas import tpu as pltpu


# ---------------------------------------------------------------------------
# Kernel
# ---------------------------------------------------------------------------
def _zscore_log1p_kernel(x_ref, mean_ref, inv_std_ref, o_ref, *,
                         g, target_count, eps, perform_scaling):
    # x_ref:       (TN, G) tile of cells, full gene axis (row-sum is tile-local)
    # mean_ref:    (1, G)  gene means
    # inv_std_ref: (1, G)  precomputed 1/(std+eps)
    x = x_ref[...].astype(jnp.float32)

    if g % 128 != 0:
        # The tail of the last 128-lane group is not guaranteed to be zero;
        # mask it so it cannot corrupt the per-row library size. One VALU
        # select per element -- free slack in a memory-bound kernel.
        lane = jax.lax.broadcasted_iota(jnp.int32, x.shape, 1)
        x = jnp.where(lane < g, x, 0.0)

    # per-cell library size: reduction over the gene/lane axis (XLU)
    l_n1 = jnp.sum(x, axis=-1, keepdims=True)                       # (TN, 1)

    # One full-precision division per ROW (negligible); log1p is the only
    # per-element transcendental (EUP) op.
    scale = target_count / (l_n1 + eps)                             # (TN, 1)
    y = jnp.log1p(x * scale)                                        # (TN, G)

    z = y - mean_ref[...]
    if perform_scaling:
        z = z * inv_std_ref[...]                                    # VPU multiply

    o_ref[...] = z.astype(o_ref.dtype)


# ---------------------------------------------------------------------------
# Wrapper helpers
# ---------------------------------------------------------------------------
def _round_up(v, m):
    return ((v + m - 1) // m) * m


def _vmem_capacity_bytes():
    """Physical VMEM of the current generation; conservative fallback (v7x)."""
    try:
        return int(pltpu.get_tpu_info().vmem_capacity_bytes)
    except Exception:
        return 64 * 1024 * 1024


def _choose_tile_n(n, g, in_bytes, out_bytes, vmem_capacity):
    """Pick a row-tile size (multiple of 8) from a generation-aware VMEM
    budget, while keeping the grid deep enough to hide pipeline prologue /
    epilogue and to feed both v7x TensorCores."""
    per_row = 2 * g * (in_bytes + out_bytes)       # double-buffered in + out
    budget = int(vmem_capacity * 0.4)              # ~40% of physical VMEM
    max_rows_budget = budget // per_row
    if max_rows_budget < 8:
        raise ValueError(
            f"G={g} is too wide for a single-pass row tile within the VMEM "
            f"budget ({budget} bytes); split the gene axis into a two-pass "
            f"(sum, then normalize) scheme instead.")
    # Throughput plateaus well before huge tiles; cap each buffer at ~8 MiB.
    max_rows_buf = max(1, (8 * 1024 * 1024) // (g * max(in_bytes, out_bytes)))
    # Keep >= 8 grid steps (>= 4 per TensorCore on v7x) when rows allow it.
    max_rows_steps = (n // 8) if n >= 64 else n
    tile_n = min(max_rows_budget, max_rows_buf, max_rows_steps)
    tile_n = max(8, (tile_n // 8) * 8)
    tile_n = min(tile_n, _round_up(n, 8))
    return tile_n


def _vmem_limit_bytes(tile_n, g, in_bytes, out_bytes, vmem_capacity):
    """Limit from actual buffer accounting + margin for Mosaic scratch."""
    needed = (2 * tile_n * g * (in_bytes + out_bytes)   # x-in + out, 2 buffers
              + 2 * 2 * g * 4                           # mean / inv_std buffers
              + (4 << 20))                              # internal-scratch margin
    limit = max(needed, 32 << 20)
    return int(min(limit, vmem_capacity - (4 << 20)))


# ---------------------------------------------------------------------------
# Public wrapper
# ---------------------------------------------------------------------------
def zscore_log1p_normalize(x_ng, mean_g, std_g, *,
                           perform_scaling=True,
                           target_count=10000,
                           eps=1e-6,
                           tile_n=None,
                           out_dtype=jnp.float32):
    """Apply ZScoreLog1pNormalize to x_ng of shape (N, G)."""
    x_ng = jnp.asarray(x_ng)            # native dtype -> no extra HBM pass
    n, g = x_ng.shape
    in_bytes = x_ng.dtype.itemsize
    out_bytes = jnp.dtype(out_dtype).itemsize

    vmem_capacity = _vmem_capacity_bytes()
    if tile_n is None:
        tile_n = _choose_tile_n(n, g, in_bytes, out_bytes, vmem_capacity)

    # Per-gene parameters as (1, G) f32 rows; 1/(std+eps) precomputed once
    # (ulp-level deviation from the reference's per-element divide).
    mean_2d = jnp.broadcast_to(jnp.asarray(mean_g, jnp.float32), (1, g))
    if std_g is None:
        assert not perform_scaling, "Must provide standard deviation `std_g`"
        inv_std_2d = jnp.ones((1, g), jnp.float32)
    else:
        std_2d = jnp.broadcast_to(jnp.asarray(std_g, jnp.float32), (1, g))
        inv_std_2d = 1.0 / (std_2d + jnp.float32(eps))

    kernel = functools.partial(
        _zscore_log1p_kernel,
        g=g,
        target_count=float(target_count),   # Python floats -> baked-in literals
        eps=float(eps),
        perform_scaling=bool(perform_scaling),
    )

    cost = pl.CostEstimate(
        flops=5 * n * g,
        transcendentals=n * g,
        bytes_accessed=n * g * (in_bytes + out_bytes) + 2 * g * 4,
    )

    return pl.pallas_call(
        kernel,
        out_shape=jax.ShapeDtypeStruct((n, g), out_dtype),
        grid_spec=pltpu.PrefetchScalarGridSpec(
            num_scalar_prefetch=0,
            grid=(pl.cdiv(n, tile_n),),     # ragged last row-tile handled by Pallas
            in_specs=[
                pl.BlockSpec((tile_n, g), lambda i: (i, 0)),  # x rows tile
                pl.BlockSpec((1, g), lambda i: (0, 0)),       # mean_g
                pl.BlockSpec((1, g), lambda i: (0, 0)),       # 1/(std+eps)
            ],
            out_specs=pl.BlockSpec((tile_n, g), lambda i: (i, 0)),
        ),
        compiler_params=pltpu.CompilerParams(
            dimension_semantics=("parallel",),
            vmem_limit_bytes=_vmem_limit_bytes(
                tile_n, g, in_bytes, out_bytes, vmem_capacity),
        ),
        cost_estimate=cost,
    )(x_ng, mean_2d, inv_std_2d)


# ---------------------------------------------------------------------------
# Pure-JAX reference (mirrors the PyTorch module)
# ---------------------------------------------------------------------------
def _reference(x_ng, mean_g, std_g, perform_scaling, target_count, eps):
    x_ng = jnp.asarray(x_ng, jnp.float32)
    l_n1 = jnp.sum(x_ng, axis=-1, keepdims=True)
    y_ng = jnp.log1p(target_count * x_ng / (l_n1 + eps))
    z_ng = y_ng - mean_g
    if perform_scaling:
        z_ng = z_ng / (std_g + eps)
    return z_ng


if __name__ == "__main__":
    key = jax.random.PRNGKey(0)

    # --- case 1: aligned shapes, f32 input, multi-step grid -----------------
    n_cells, n_genes = 16, 256
    k1, k2, k3 = jax.random.split(key, 3)
    x_ng = jax.random.poisson(k1, lam=3.0, shape=(n_cells, n_genes)).astype(jnp.float32)
    mean_g = jax.random.normal(k2, (n_genes,), jnp.float32) * 0.5
    std_g = jax.random.uniform(k3, (n_genes,), jnp.float32, minval=0.5, maxval=1.5)

    out = zscore_log1p_normalize(
        x_ng, mean_g, std_g,
        perform_scaling=True, target_count=10000, eps=1e-6, tile_n=8,
    )
    out = jax.block_until_ready(out)
    ref = _reference(x_ng, mean_g, std_g, True, 10000.0, 1e-6)
    assert out.shape == (n_cells, n_genes)
    assert jnp.allclose(out, ref, atol=1e-4, rtol=1e-4), "mismatch (aligned)"

    # --- case 2: ragged N/G + native int32 counts (no wrapper copies) -------
    n2, g2 = 13, 100
    k4, k5, k6 = jax.random.split(jax.random.PRNGKey(1), 3)
    x2 = jax.random.poisson(k4, lam=2.0, shape=(n2, g2))          # int dtype
    m2 = jax.random.normal(k5, (g2,), jnp.float32) * 0.3
    s2 = jax.random.uniform(k6, (g2,), jnp.float32, minval=0.5, maxval=1.5)

    out2 = zscore_log1p_normalize(
        x2, m2, s2, perform_scaling=True, target_count=10000, eps=1e-6,
    )
    out2 = jax.block_until_ready(out2)
    ref2 = _reference(x2, m2, s2, True, 10000.0, 1e-6)
    assert out2.shape == (n2, g2)
    assert jnp.allclose(out2, ref2, atol=1e-4, rtol=1e-4), "mismatch (ragged)"

    # --- case 3: no scaling, scalar mean, std_g=None ------------------------
    out3 = zscore_log1p_normalize(
        x_ng, 0.25, None, perform_scaling=False, target_count=10000, eps=1e-6,
    )
    out3 = jax.block_until_ready(out3)
    ref3 = _reference(x_ng, 0.25, None, False, 10000.0, 1e-6)
    assert jnp.allclose(out3, ref3, atol=1e-4, rtol=1e-4), "mismatch (no-scale)"

    print("KERNEL_OK")
</pallas_src>

<mosaic_0001>
module attributes {stable_mosaic.version = 11 : i64} {
  func.func @_zscore_log1p_kernel(%arg0: i32, %arg1: memref<8x256xf32, #tpu.memory_space<vmem>>, %arg2: memref<1x256xf32, #tpu.memory_space<vmem>>, %arg3: memref<1x256xf32, #tpu.memory_space<vmem>>, %arg4: memref<8x256xf32, #tpu.memory_space<vmem>>) attributes {dimension_semantics = [#tpu.dimension_semantics<parallel>], iteration_bounds = array<i64: 2>, scalar_prefetch = 0 : i64, scratch_operands = 0 : i64, tpu.core_type = #tpu.core_type<tc>, window_params = [{transform_indices = @transform_0, window_bounds = array<i64: 8, 256>}, {pipeline_mode = #tpu.pipeline_mode<synchronous>, transform_indices = @transform_1, window_bounds = array<i64: 1, 256>}, {pipeline_mode = #tpu.pipeline_mode<synchronous>, transform_indices = @transform_2, window_bounds = array<i64: 1, 256>}, {transform_indices = @transform_3, window_bounds = array<i64: 8, 256>}]} {
    %c0 = arith.constant 0 : index
    %c0_0 = arith.constant 0 : index
    %0 = vector.load %arg1[%c0, %c0_0] : memref<8x256xf32, #tpu.memory_space<vmem>>, vector<8x256xf32>
    %cst = arith.constant dense<0.000000e+00> : vector<8xf32>
    %1 = vector.multi_reduction <add>, %0, %cst [1] : vector<8x256xf32> to vector<8xf32>
    %2 = vector.shape_cast %1 : vector<8xf32> to vector<8x1xf32>
    %cst_1 = arith.constant 9.99999997E-7 : f32
    %3 = vector.broadcast %cst_1 : f32 to vector<8x1xf32>
    %4 = arith.addf %2, %3 : vector<8x1xf32>
    %cst_2 = arith.constant 1.000000e+04 : f32
    %5 = vector.broadcast %cst_2 : f32 to vector<8x1xf32>
    %6 = arith.divf %5, %4 : vector<8x1xf32>
    %7 = vector.broadcast %6 : vector<8x1xf32> to vector<8x256xf32>
    %8 = arith.mulf %0, %7 : vector<8x256xf32>
    %9 = math.log1p %8 : vector<8x256xf32>
    %c0_3 = arith.constant 0 : index
    %c0_4 = arith.constant 0 : index
    %10 = vector.load %arg2[%c0_3, %c0_4] : memref<1x256xf32, #tpu.memory_space<vmem>>, vector<1x256xf32>
    %11 = vector.broadcast %10 : vector<1x256xf32> to vector<8x256xf32>
    %12 = arith.subf %9, %11 : vector<8x256xf32>
    %c0_5 = arith.constant 0 : index
    %c0_6 = arith.constant 0 : index
    %13 = vector.load %arg3[%c0_5, %c0_6] : memref<1x256xf32, #tpu.memory_space<vmem>>, vector<1x256xf32>
    %14 = vector.broadcast %13 : vector<1x256xf32> to vector<8x256xf32>
    %15 = arith.mulf %12, %14 : vector<8x256xf32>
    %c0_7 = arith.constant 0 : index
    %c0_8 = arith.constant 0 : index
    %16 = vector.load %arg4[%c0_7, %c0_8] : memref<8x256xf32, #tpu.memory_space<vmem>>, vector<8x256xf32>
    tpu.vector_store %arg4[%c0_7, %c0_8], %15 {strides = array<i32>} : memref<8x256xf32, #tpu.memory_space<vmem>>, vector<8x256xf32>,
    return
  }
  func.func @transform_0(%arg0: i32) -> (i32, i32) {
    %c0_i32 = arith.constant 0 : i32
    %c0_i32_0 = arith.constant 0 : i32
    return %arg0, %c0_i32 : i32, i32
  }
  func.func @transform_1(%arg0: i32) -> (i32, i32) {
    %c0_i32 = arith.constant 0 : i32
    %c0_i32_0 = arith.constant 0 : i32
    %c0_i32_1 = arith.constant 0 : i32
    return %c0_i32, %c0_i32_0 : i32, i32
  }
  func.func @transform_2(%arg0: i32) -> (i32, i32) {
    %c0_i32 = arith.constant 0 : i32
    %c0_i32_0 = arith.constant 0 : i32
    %c0_i32_1 = arith.constant 0 : i32
    return %c0_i32, %c0_i32_0 : i32, i32
  }
  func.func @transform_3(%arg0: i32) -> (i32, i32) {
    %c0_i32 = arith.constant 0 : i32
    %c0_i32_0 = arith.constant 0 : i32
    return %arg0, %c0_i32 : i32, i32
  }
}

</mosaic_0001>

<bundles_post_ra>
// kernel: tpu_custom_call.1
= control target key start
LH: loop header
LB: loop body
LE: loop exit
PB: predicated region body
PF: predicated region fallthrough
CT: control target
= control target key end

     0   :  { %8 = vsyncpa [#allocation3], 0  ;;  %s805_s0 = inlined_call_operand.hbm [shape: f32[16,256], index: 0, kind: input, shape index: {}]   ;;  %s806_s1 = inlined_call_operand.hbm [shape: f32[1,256], index: 1, kind: input, shape index: {}]   ;;  %s807_s2 = inlined_call_operand.hbm [shape: f32[1,256], index: 2, kind: input, shape index: {}]   ;;  %s808_s3 = inlined_call_operand.hbm [shape: f32[16,256], index: 3, kind: output, shape index: {}]  }
   0x1   :  { %10 = vsyncpa [#allocation3 + $0x1], 0 }
   0x2   :  { %11 = vsyncpa [#allocation6], 0 }
   0x3   :  { %12 = vsyncpa [#allocation4], 0 }
   0x4   :  { %14 = vsyncpa [#allocation4 + $0x1], 0  ;;  %s660_s12 = smov 0   ;;  %s662_s13 = smov 0  }
   0x5   :  { %s664_s14 = smov 0   ;;  %s666_s15 = smov 0  }
   0x6 LB: > { %s681_s16 = sadd.s32 4294967295, %s636_s15   ;;  %s383_s17 = sadd.s32 4294967294, %s636_s15   ;;  %s636_s15 = sphi %s666_s15, %s818_s15   ;;  %s632_s14 = sphi %s664_s14, %s817_s14   ;;  %s628_s13 = sphi %s662_s13, %s816_s13   ;;  %s624_s12 = sphi %s660_s12, %s815_s12  }
   0x7   : > { %p40_p0 = scmp.ne.s32.totalorder %s628_s13, %s624_s12  ;;  %p41_p1 = scmp.eq.s32.totalorder %s681_s16, 0 }
   0x8   : > { %p106_p2 = scmp.eq.s32.totalorder %s681_s16, 1  ;;  %p112_p3 = scmp.eq.s32.totalorder %s383_s17, 1 }
   0x9   : > { %p690_p4 = por %p41_p1, %p40_p0  ;;  %p384_p5 = scmp.ge.s32.totalorder %s636_s15, 1 }
   0xa   : > { %p695_p6 = por %p112_p3, %p40_p0  ;;  %p119_p7 = scmp.lt.s32.totalorder %s636_s15, 3 }
   0xb   : > { %s131_s22 = sshll.u32 %s806_s1, 4  ;;  %s638_s24 = smov [#allocation5]   ;;  %s132_s22 = int_to_ptr.hbm [resolvable:$true] %s131_s22 }
   0xc   : > { %p703_p8 = pnand %p384_p5, %p119_p7  ;;  %s133_s25 = sshll.u32 %s638_s24, 4  ;;  %s134_s25 = int_to_ptr.vmem [resolvable:$true] %s133_s25 }
   0xd   : > { %s143_s28 = sshll.u32 %s807_s2, 4  ;;  %s639_s29 = smov [#allocation7]   ;;  %s144_s28 = int_to_ptr.hbm [resolvable:$true] %s143_s28 }
   0xe   : > { %p415_p10 = pneg %p703_p8  ;;  %s145_s30 = sshll.u32 %s639_s29, 4  ;;  %s146_s30 = int_to_ptr.vmem [resolvable:$true] %s145_s30 }
   0xf   : > { %s716_s4 = sadd.s32 1, %s636_s15   ;;  %s27_s5 = sadd.s32 1, %s632_s14 }
  0x10   : > { %p416_p11 = pnand %p415_p10, %p41_p1  ;;  %s24_s6 = ssub.s32 %s636_s15, %s716_s4 }
  0x11   : > { %p34_p12 = scmp.ne.s32.totalorder %s632_s14, %s628_s13  ;;  %p25_p13 = scmp.eq.s32.totalorder %s24_s6, 0 }
  0x12   : > { %418 = dma.hbm_to_vmem [thread:$0]  (!%p416_p11), %s132_s22, 32, %s134_s25, [#allocation6]  }
  0x13   : > { %421 = dma.hbm_to_vmem [thread:$0]  (!%p416_p11), %s144_s28, 32, %s146_s30, [#allocation6]  }
  0x14   : > { %p35_p0 = scmp.eq.s32.totalorder %s636_s15, 0  ;;  %p726_p3 = por %p106_p2, %p34_p12 }
  0x15   : > { %p432_p5 = scmp.lt.s32.totalorder %s636_s15, 2  ;;  %s156_s9 = sand.u32 1, %s632_s14  }
  0x16   : > { %s732_s8 = scalar_select %p25_p13, %s632_s14, %s27_s5  }
  0x17   : > { %p36_p7 = por %p35_p0, %p34_p12  ;;  %s388_s10 = sshll.u32 %s156_s9, 4 }
  0x18   : > { %s401_s11 = sshll.u32 %s636_s15, 4  ;;  %s160_s22 = scalar_lea.vmem [#allocation2], %s388_s10 }
  0x19   : > { %s165_s21 = scalar_lea.hbm %s805_s0, %s401_s11  ;;  %s169_s24 = sshll.u32 %s160_s22, 4  ;;  %s170_s24 = int_to_ptr.vmem [resolvable:$true] %s169_s24 }
  0x1a   : > { %s167_s25 = sshll.u32 %s165_s21, 4  ;;  %p739_p2 = pnand %p432_p5, %p36_p7  ;;  %s168_s25 = int_to_ptr.hbm [resolvable:$true] %s167_s25 }
  0x1b   : > { %s157_s27 = scalar_lea.sflag [#allocation3], %s156_s9  ;;  %s536_s28 = sshra.s32 %s168_s25, 4  ;;  %s537_s28 = int_to_ptr.hbm [resolvable:$true] %s536_s28 }
  0x1c   : > { %s538_s29 = scalar_lea.hbm %s537_s28, 16  ;;  %p540_p11 = pneg %p739_p2 }
  0x1d   : > { %p539_p10 = scmp.ne.s32.totalorder %s537_s28, %s538_s29  ;;  %s543_s6 = scalar_lea.hbm %s805_s0, 32 }
  0x1e   : > { %p544_p0 = scmp.lt.s32.totalorder %s537_s28, %s805_s0  ;;  %p545_p5 = scmp.lt.s32.totalorder %s543_s6, %s538_s29 }
  0x1f   : > { %p541_p12 = pnand %p540_p11, %p539_p10 }
  0x20   : > { %p546_p7 = por %p545_p5, %p544_p0 }
  0x21   : > { %p542_p13 = pneg %p541_p12 }
  0x23   : > { %p547_p9 = pnand %p546_p7, %p542_p13 }
  0x25   : > { %550 = shalt.err (!%p547_p9)
}
  0x26   : > { %425 = dma.hbm_to_vmem [thread:$0]  (!%p739_p2), %s168_s25, 256, %s170_s24, %s157_s27  }
  0x27   : > { %178 = sbr.rel (%p703_p8) target bundleno = 209 (0xd1), region = 32  ;;  %s756_s9 = sand.u32 (!%p703_p8), 1, %s628_s13  }
  0x28   : > { %s392_s17 = sshll.u32 (!%p703_p8), %s756_s9, 4  ;;  %s181_s20 = scalar_lea.sflag (!%p703_p8), [#allocation3], %s756_s9 }
  0x29   : > { %s184_s21 = scalar_lea.vmem (!%p703_p8), [#allocation2], %s392_s17 }
  0x2c   : > { %611 = dma.done.wait (%p690_p4), %s181_s20, 256  }
  0x2d   : > { %613 = vsyncadd (%p690_p4), %s181_s20, 4294967040 }
  0x2e   : > { %615 = dma.done.wait (%p41_p1), [#allocation6], 64  }
  0x2f   : > { %617 = vsyncadd (%p41_p1), [#allocation6], 4294967232  ;;  %v218_v0 = vld [vmem:[%s184_s21] sm:$0xff]  ;;  %v219_v1 = vld [vmem:[%s184_s21 + $0x8] sm:$0xff]  ;;  %s402_s18 = sshll.u32 %s681_s16, 4  ;;  %s217_s16 = scalar_lea.vmem [#allocation8], %s392_s17 }
  0x30   : > { %v220_v2 = vadd.f32 %v219_v1, %v218_v0  ;;  %v259_v23 = vld [vmem:[#allocation5] sm:$0x3]  ;;  %v267_v27 = vld [vmem:[#allocation7] sm:$0x3]  ;;  %s289_s24 = scalar_lea.hbm %s808_s3, %s402_s18  ;;  %s291_s25 = sshll.u32 %s217_s16, 4  ;;  %s292_s25 = int_to_ptr.vmem [resolvable:$true] %s291_s25 }
  0x31   : > { %v261_v29 = vperm.slane %v259_v23, 0  ;;  %v262_v33 = vperm.slane %v259_v23, 1  ;;  %v269_v36 = vperm.slane %v267_v27, 0  ;;  %v270_v38 = vperm.slane %v267_v27, 1  ;;  %s293_s26 = sshll.u32 %s289_s24, 4  ;;  %s278_s27 = scalar_lea.sflag [#allocation4], %s756_s9  ;;  %s294_s26 = int_to_ptr.hbm [resolvable:$true] %s293_s26 }
  0x32   : > { %221 = vadd.xlane.f32.xlu0 %v220_v2  ;;  %s580_s28 = sshra.s32 %s294_s26, 4  ;;  %s586_s6 = scalar_lea.hbm %s808_s3, 32  ;;  %s581_s28 = int_to_ptr.hbm [resolvable:$true] %s580_s28 }
  0x33   : > { %s582_s29 = scalar_lea.hbm %s581_s28, 16  ;;  %p587_p9 = scmp.lt.s32.totalorder %s581_s28, %s808_s3 }
  0x34   : > { %p583_p1 = scmp.ne.s32.totalorder %s581_s28, %s582_s29  ;;  %p588_p2 = scmp.lt.s32.totalorder %s586_s6, %s582_s29 }
  0x36   : > { %p584_p4 = pnand %p583_p1, %p726_p3  ;;  %p589_p10 = por %p588_p2, %p587_p9 }
  0x38   : > { %p585_p8 = pneg %p584_p4 }
  0x3a   : > { %p590_p11 = pnand %p589_p10, %p585_p8 }
  0xa5   : > { %v222_v3 = vpop.xlane.xlu0 %221 }
  0xa6   : > { %v223_v4 = vadd.f32 1e-06, %v222_v3 }
  0xa8   : > { %470 = vrcp.f32 %v223_v4  ;;  %v235_v8 = vand.u32 2147483648, %v223_v4  ;;  %v233_v10 = vand.u32 2147483647, %v223_v4  ;;  %vm229_vm1 = vweird.f32 %v223_v4 }
  0xaa   : > { %v236_v12 = vor.u32 1.1754944e-38, %v235_v8  ;;  %vm234_vm3 = vcmp.eq.f32.partialorder %v233_v10, 8.507059e+37 }
  0xae   : > { %v471_v5 = vpop.eup %470 }
  0xaf   : > { %v225_v6 = vmul.f32 %v471_v5, %v223_v4  ;;  %vm230_vm0 = vweird.f32 %v471_v5 }
  0xb0   : > { %vm231_vm2 = vmor %vm229_vm1, %vm230_vm0 }
  0xb1   : > { %v226_v7 = vsub.f32 1.0, %v225_v6 }
  0xb3   : > { %v227_v9 = vmul.f32 %v471_v5, %v226_v7 }
  0xb5   : > { %v228_v11 = vadd.f32 %v471_v5, %v227_v9 }
  0xb7   : > { %v232_v13 = vsel %vm231_vm2, %v471_v5, %v228_v11 }
  0xb8   : > { %v237_v14 = vsel %vm234_vm3, %v236_v12, %v232_v13 }
  0xb9   : > { %v238_v15 = vmul.f32 10000.0, %v237_v14 }
  0xbb   : > { %v239_v16 = vmul.f32 %v238_v15, %v218_v0  ;;  %v240_v17 = vmul.f32 %v238_v15, %v219_v1 }
  0xbd   : > { %v241_v18 = vadd.f32 1.0, %v239_v16  ;;  %v250_v19 = vadd.f32 1.0, %v240_v17  ;;  %v244_v20 = vmul.f32 -0.5, %v239_v16  ;;  %v253_v21 = vmul.f32 -0.5, %v240_v17 }
  0xbe   : > { %v247_v24 = vand.u32 2147483647, %v239_v16  ;;  %v256_v26 = vand.u32 2147483647, %v240_v17 }
  0xbf   : > { %472 = vlog2.f32 %v241_v18  ;;  %v245_v22 = vadd.f32 1.0, %v244_v20  ;;  %v254_v25 = vadd.f32 1.0, %v253_v21 }
  0xc0   : > { %474 = vlog2.f32 %v250_v19  ;;  %vm248_vm4 = vcmp.lt.f32.partialorder %v247_v24, 0.0004427343  ;;  %vm257_vm5 = vcmp.lt.f32.partialorder %v256_v26, 0.0004427343 }
  0xc1   : > { %v246_v32 = vmul.f32 %v245_v22, %v239_v16  ;;  %v255_v35 = vmul.f32 %v254_v25, %v240_v17 }
  0xc5   : > { %v473_v28 = vpop.eup %472 }
  0xc6   : > { %v475_v30 = vpop.eup %474  ;;  %v243_v31 = vmul.f32 0.6931472, %v473_v28 }
  0xc7   : > { %v252_v34 = vmul.f32 0.6931472, %v475_v30 }
  0xc8   : > { %v249_v37 = vsel %vm248_vm4, %v246_v32, %v243_v31 }
  0xc9   : > { %v258_v39 = vsel %vm257_vm5, %v255_v35, %v252_v34  ;;  %v265_v40 = vsub.f32 %v249_v37, %v261_v29 }
  0xca   : > { %v266_v41 = vsub.f32 %v258_v39, %v262_v33 }
  0xcb   : > { %v273_v42 = vmul.f32 %v269_v36, %v265_v40 }
  0xcc   : > { %v274_v43 = vmul.f32 %v270_v38, %v266_v41 }
  0xcd   : > { %275 = vst [vmem:[%s217_s16] sm:$0xff] %v273_v42 }
  0xce   : > { %276 = vst [vmem:[%s217_s16 + $0x8] sm:$0xff] %v274_v43 }
  0xcf   : > { %593 = shalt.err (!%p590_p11)
}
  0xd0   : > { %413 = dma.vmem_to_hbm [thread:$0]  (%p726_p3), %s292_s25, 256, %s294_s26, %s278_s27  }
  0xd1 PF: > { %s305_s9 = sand.u32 1, %s624_s12   ;;  %p814_p12 = scmp.ge.s32.totalorder %s636_s15, 2 }
  0xd2   : > { %s306_s17 = scalar_lea.sflag [#allocation4], %s305_s9 }
  0xd3   : > { %p427_p13 = pnand %p814_p12, %p695_p6 }
  0xd5   : > { %p428_p0 = pneg %p427_p13 }
  0xd7   : > { %619 = dma.done.wait (%p428_p0), %s306_s17, 256  }
  0xd8   : > { %621 = vsyncadd (%p428_p0), %s306_s17, 4294967040  ;;  %p17_p5 = scmp.ge.s32.totalorder %s716_s4, 4   ;;  %s815_s12 = smov %s628_s13 }
  0xd9   : > { %s816_s13 = smov %s632_s14  ;;  %s817_s14 = smov %s732_s8 }
  0xda   : > { %s818_s15 = smov %s716_s4  ;;  %19 = sbr.rel (!%p17_p5) target bundleno = 6 (0x6), region = 85 }
  0xdf   :  { %312 = vsyncpa [#allocation3], 1 }
  0xe0   :  { %314 = vsyncpa [#allocation3 + $0x1], 1 }
  0xe1   :  { %315 = vsyncpa [#allocation6], 1 }
  0xe2   :  { %316 = vsyncpa [#allocation4], 1 }
  0xe3   :  { %318 = vsyncpa [#allocation4 + $0x1], 1 }

</bundles_post_ra>
